<compile_context>
chip_gen: v7x
topology: tpu7x:2x2x1
jax: 0.10.0
libtpu: 0.0.40
codegen_flags: <defaults>
</compile_context>

<pallas_src>
import math

import jax
import jax.numpy as jnp
from jax.experimental import pallas as pl
from jax.experimental.pallas import tpu as pltpu


def _mlp_kernel(nlayer):
    def kernel(x_ref, w_in_ref, b_in_ref, w_hh_ref, b_hh_ref,
               w_out_ref, b_out_ref, o_ref):
        # x: (TB, in_dim) f32.  Weights arrive as bf16 (halves the dominant
        # HBM->VMEM DMA); upcast before the dot, accumulate in f32 on the MXU.
        h = jnp.dot(x_ref[...], w_in_ref[...].astype(jnp.float32),
                    preferred_element_type=jnp.float32) + b_in_ref[...]
        for i in range(nlayer):          # nlayer is small & static -> unrolled
            h = jnp.tanh(h)
            h = jnp.dot(h, w_hh_ref[i].astype(jnp.float32),
                        preferred_element_type=jnp.float32) + b_hh_ref[i]
        h = jnp.tanh(h)
        # NOTE: out_dim=16 (<128 lanes) -> masked vst; fine at this size.
        o_ref[...] = jnp.dot(h, w_out_ref[...].astype(jnp.float32),
                             preferred_element_type=jnp.float32) + b_out_ref[...]
    return kernel


def mlp_forward_batched(x_batch, params, nlayer):
    """x_batch: (B, *sample_shape). Each sample is flattened to in_dim.
    Returns (B, out_dim)."""
    w_in, b_in, w_hh, b_hh, w_out, b_out = params
    in_dim, hid_dim = w_in.shape
    out_dim = w_out.shape[1]

    B = x_batch.shape[0]
    x2 = x_batch.reshape(B, -1).astype(jnp.float32)
    assert x2.shape[1] == in_dim

    # Batch tile: multiple of 8 sublanes; 128 rows keeps the MXU busy when the
    # caller actually batches. Pad B up to a multiple of the tile.
    if B >= 128:
        tb = 128
    else:
        tb = max(8, ((B + 7) // 8) * 8)
    b_pad = ((B + tb - 1) // tb) * tb
    if b_pad != B:
        x2 = jnp.pad(x2, ((0, b_pad - B), (0, 0)))

    grid = (b_pad // tb,)

    flops = 2 * b_pad * (in_dim * hid_dim
                         + nlayer * hid_dim * hid_dim
                         + hid_dim * out_dim)
    transcendentals = b_pad * (nlayer + 1) * hid_dim
    bytes_accessed = (x2.size * 4
                      + (w_in.size + w_hh.size + w_out.size) * 2   # bf16 weights
                      + (b_in.size + b_hh.size + b_out.size) * 4
                      + b_pad * out_dim * 4)

    out = pl.pallas_call(
        _mlp_kernel(nlayer),
        out_shape=jax.ShapeDtypeStruct((b_pad, out_dim), jnp.float32),
        grid_spec=pltpu.PrefetchScalarGridSpec(
            num_scalar_prefetch=0,
            grid=grid,
            in_specs=[
                # Activations: one batch tile per grid step.
                pl.BlockSpec((tb, in_dim), lambda i: (i, 0)),
                # Weights/biases: full arrays, constant block index -> stay
                # resident in VMEM (no re-DMA across batch tiles).
                pl.BlockSpec(w_in.shape, lambda i: (0, 0)),
                pl.BlockSpec(b_in.shape, lambda i: (0, 0)),
                pl.BlockSpec(w_hh.shape, lambda i: (0, 0, 0)),
                pl.BlockSpec(b_hh.shape, lambda i: (0, 0, 0)),
                pl.BlockSpec(w_out.shape, lambda i: (0, 0)),
                pl.BlockSpec(b_out.shape, lambda i: (0, 0)),
            ],
            out_specs=pl.BlockSpec((tb, out_dim), lambda i: (i, 0)),
        ),
        compiler_params=pltpu.CompilerParams(
            # Batch tiles are independent -> shard across v7x's 2 TensorCores.
            dimension_semantics=("parallel",),
            vmem_limit_bytes=32 * 1024 * 1024,
        ),
        cost_estimate=pl.CostEstimate(
            flops=flops,
            transcendentals=transcendentals,
            bytes_accessed=bytes_accessed,
        ),
    )(x2, w_in, b_in, w_hh, b_hh, w_out, b_out)
    return out[:B]


def mlp_forward(x, params, nlayer):
    """Matches MLP.forward: torch.flatten(input) -> ... -> 1-D (out_dim,)."""
    out = mlp_forward_batched(x.reshape(1, -1), params, nlayer)
    return out[0]


def init_params(key, in_dim, out_dim, hid_dim, nlayer):
    """Mimics nn.Linear's U(-1/sqrt(fan_in), 1/sqrt(fan_in)).
    Weights stored as (in_features, out_features) in bf16; biases in f32."""
    ks = jax.random.split(key, 5)

    def lin(kw, kb, fan_in, fan_out):
        bound = 1.0 / math.sqrt(fan_in)
        w = jax.random.uniform(kw, (fan_in, fan_out), jnp.float32, -bound, bound)
        b = jax.random.uniform(kb, (1, fan_out), jnp.float32, -bound, bound)
        return w.astype(jnp.bfloat16), b

    w_in, b_in = lin(ks[0], ks[1], in_dim, hid_dim)
    w_out, b_out = lin(ks[2], ks[3], hid_dim, out_dim)

    hh_w, hh_b = [], []
    kk = jax.random.split(ks[4], 2 * nlayer)
    for i in range(nlayer):
        w, b = lin(kk[2 * i], kk[2 * i + 1], hid_dim, hid_dim)
        hh_w.append(w)
        hh_b.append(b)
    w_hh = jnp.stack(hh_w, axis=0)                 # (nlayer, hid, hid) bf16
    b_hh = jnp.stack(hh_b, axis=0)                 # (nlayer, 1, hid)   f32
    return (w_in, b_in, w_hh, b_hh, w_out, b_out)


def mlp_reference(x_flat_batch, params, nlayer):
    """Pure-JAX reference using the same bf16-rounded weights (upcast to f32)."""
    w_in, b_in, w_hh, b_hh, w_out, b_out = params
    h = x_flat_batch.astype(jnp.float32) @ w_in.astype(jnp.float32) + b_in
    for i in range(nlayer):
        h = jnp.tanh(h)
        h = h @ w_hh[i].astype(jnp.float32) + b_hh[i]
    h = jnp.tanh(h)
    return h @ w_out.astype(jnp.float32) + b_out


if __name__ == "__main__":
    key = jax.random.PRNGKey(0)
    k_x, k_p, k_b = jax.random.split(key, 3)

    # Small NCHW-like input; torch.flatten() turns it into a 2048-vector.
    x = jax.random.normal(k_x, (2, 4, 16, 16), dtype=jnp.float32)
    in_dim = 2 * 4 * 16 * 16
    out_dim = 16
    hid_dim = 32
    nlayer = 2

    params = init_params(k_p, in_dim, out_dim, hid_dim, nlayer)

    # --- single-sample forward: exact semantics of the torch module ---
    out = mlp_forward(x, params, nlayer)
    out = jax.block_until_ready(out)
    ref = mlp_reference(x.reshape(1, -1), params, nlayer)[0]
    assert out.shape == (out_dim,)
    assert jnp.allclose(out, ref, atol=1e-3, rtol=1e-3)

    # --- batched path (throughput mode): many independent MLP inputs ---
    xb = jax.random.normal(k_b, (16, 2, 4, 16, 16), dtype=jnp.float32)
    outb = jax.block_until_ready(mlp_forward_batched(xb, params, nlayer))
    refb = mlp_reference(xb.reshape(16, -1), params, nlayer)
    assert outb.shape == (16, out_dim)
    assert jnp.allclose(outb, refb, atol=1e-3, rtol=1e-3)

    print("KERNEL_OK")
</pallas_src>

<mosaic_0001>
module attributes {stable_mosaic.version = 11 : i64} {
  func.func @kernel(%arg0: i32, %arg1: memref<8x2048xf32, #tpu.memory_space<vmem>>, %arg2: memref<2048x32xbf16, #tpu.memory_space<vmem>>, %arg3: memref<1x32xf32, #tpu.memory_space<vmem>>, %arg4: memref<2x32x32xbf16, #tpu.memory_space<vmem>>, %arg5: memref<2x1x32xf32, #tpu.memory_space<vmem>>, %arg6: memref<32x16xbf16, #tpu.memory_space<vmem>>, %arg7: memref<1x16xf32, #tpu.memory_space<vmem>>, %arg8: memref<8x16xf32, #tpu.memory_space<vmem>>) attributes {dimension_semantics = [#tpu.dimension_semantics<parallel>], iteration_bounds = array<i64: 1>, scalar_prefetch = 0 : i64, scratch_operands = 0 : i64, tpu.core_type = #tpu.core_type<tc>, window_params = [{transform_indices = @transform_0, window_bounds = array<i64: 8, 2048>}, {pipeline_mode = #tpu.pipeline_mode<synchronous>, transform_indices = @transform_1, window_bounds = array<i64: 2048, 32>}, {pipeline_mode = #tpu.pipeline_mode<synchronous>, transform_indices = @transform_2, window_bounds = array<i64: 1, 32>}, {pipeline_mode = #tpu.pipeline_mode<synchronous>, transform_indices = @transform_3, window_bounds = array<i64: 2, 32, 32>}, {pipeline_mode = #tpu.pipeline_mode<synchronous>, transform_indices = @transform_4, window_bounds = array<i64: 2, 1, 32>}, {pipeline_mode = #tpu.pipeline_mode<synchronous>, transform_indices = @transform_5, window_bounds = array<i64: 32, 16>}, {pipeline_mode = #tpu.pipeline_mode<synchronous>, transform_indices = @transform_6, window_bounds = array<i64: 1, 16>}, {transform_indices = @transform_7, window_bounds = array<i64: 8, 16>}]} {
    %c0 = arith.constant 0 : index
    %c0_0 = arith.constant 0 : index
    %0 = vector.load %arg1[%c0, %c0_0] : memref<8x2048xf32, #tpu.memory_space<vmem>>, vector<8x2048xf32>
    %c0_1 = arith.constant 0 : index
    %c0_2 = arith.constant 0 : index
    %1 = vector.load %arg2[%c0_1, %c0_2] : memref<2048x32xbf16, #tpu.memory_space<vmem>>, vector<2048x32xbf16>
    %2 = arith.extf %1 : vector<2048x32xbf16> to vector<2048x32xf32>
    %cst = arith.constant dense<0.000000e+00> : vector<8x32xf32>
    %3 = tpu.matmul %0, %2, %cst {dimension_numbers = #tpu.dot_dimension_numbers<[1], [0], [0], [1], [0, 0, 1, 1], [], []>} : vector<8x2048xf32>, vector<2048x32xf32>, vector<8x32xf32> -> vector<8x32xf32>
    %c0_3 = arith.constant 0 : index
    %c0_4 = arith.constant 0 : index
    %4 = vector.load %arg3[%c0_3, %c0_4] : memref<1x32xf32, #tpu.memory_space<vmem>>, vector<1x32xf32>
    %5 = vector.broadcast %4 : vector<1x32xf32> to vector<8x32xf32>
    %6 = arith.addf %3, %5 : vector<8x32xf32>
    %7 = math.tanh %6 : vector<8x32xf32>
    %c0_5 = arith.constant 0 : index
    %c0_6 = arith.constant 0 : index
    %c0_7 = arith.constant 0 : index
    %8 = vector.load %arg4[%c0_5, %c0_6, %c0_7] : memref<2x32x32xbf16, #tpu.memory_space<vmem>>, vector<1x32x32xbf16>
    %9 = vector.shape_cast %8 : vector<1x32x32xbf16> to vector<32x32xbf16>
    %10 = arith.extf %9 : vector<32x32xbf16> to vector<32x32xf32>
    %cst_8 = arith.constant dense<0.000000e+00> : vector<8x32xf32>
    %11 = tpu.matmul %7, %10, %cst_8 {dimension_numbers = #tpu.dot_dimension_numbers<[1], [0], [0], [1], [0, 0, 1, 1], [], []>} : vector<8x32xf32>, vector<32x32xf32>, vector<8x32xf32> -> vector<8x32xf32>
    %c0_9 = arith.constant 0 : index
    %c0_10 = arith.constant 0 : index
    %c0_11 = arith.constant 0 : index
    %12 = vector.load %arg5[%c0_9, %c0_10, %c0_11] : memref<2x1x32xf32, #tpu.memory_space<vmem>>, vector<1x1x32xf32>
    %13 = vector.shape_cast %12 : vector<1x1x32xf32> to vector<1x32xf32>
    %14 = vector.broadcast %13 : vector<1x32xf32> to vector<8x32xf32>
    %15 = arith.addf %11, %14 : vector<8x32xf32>
    %16 = math.tanh %15 : vector<8x32xf32>
    %c1 = arith.constant 1 : index
    %c0_12 = arith.constant 0 : index
    %c0_13 = arith.constant 0 : index
    %17 = vector.load %arg4[%c1, %c0_12, %c0_13] : memref<2x32x32xbf16, #tpu.memory_space<vmem>>, vector<1x32x32xbf16>
    %18 = vector.shape_cast %17 : vector<1x32x32xbf16> to vector<32x32xbf16>
    %19 = arith.extf %18 : vector<32x32xbf16> to vector<32x32xf32>
    %cst_14 = arith.constant dense<0.000000e+00> : vector<8x32xf32>
    %20 = tpu.matmul %16, %19, %cst_14 {dimension_numbers = #tpu.dot_dimension_numbers<[1], [0], [0], [1], [0, 0, 1, 1], [], []>} : vector<8x32xf32>, vector<32x32xf32>, vector<8x32xf32> -> vector<8x32xf32>
    %c1_15 = arith.constant 1 : index
    %c0_16 = arith.constant 0 : index
    %c0_17 = arith.constant 0 : index
    %21 = vector.load %arg5[%c1_15, %c0_16, %c0_17] : memref<2x1x32xf32, #tpu.memory_space<vmem>>, vector<1x1x32xf32>
    %22 = vector.shape_cast %21 : vector<1x1x32xf32> to vector<1x32xf32>
    %23 = vector.broadcast %22 : vector<1x32xf32> to vector<8x32xf32>
    %24 = arith.addf %20, %23 : vector<8x32xf32>
    %25 = math.tanh %24 : vector<8x32xf32>
    %c0_18 = arith.constant 0 : index
    %c0_19 = arith.constant 0 : index
    %26 = vector.load %arg6[%c0_18, %c0_19] : memref<32x16xbf16, #tpu.memory_space<vmem>>, vector<32x16xbf16>
    %27 = arith.extf %26 : vector<32x16xbf16> to vector<32x16xf32>
    %cst_20 = arith.constant dense<0.000000e+00> : vector<8x16xf32>
    %28 = tpu.matmul %25, %27, %cst_20 {dimension_numbers = #tpu.dot_dimension_numbers<[1], [0], [0], [1], [0, 0, 1, 1], [], []>} : vector<8x32xf32>, vector<32x16xf32>, vector<8x16xf32> -> vector<8x16xf32>
    %c0_21 = arith.constant 0 : index
    %c0_22 = arith.constant 0 : index
    %29 = vector.load %arg7[%c0_21, %c0_22] : memref<1x16xf32, #tpu.memory_space<vmem>>, vector<1x16xf32>
    %30 = vector.broadcast %29 : vector<1x16xf32> to vector<8x16xf32>
    %31 = arith.addf %28, %30 : vector<8x16xf32>
    %c0_23 = arith.constant 0 : index
    %c0_24 = arith.constant 0 : index
    %32 = vector.load %arg8[%c0_23, %c0_24] : memref<8x16xf32, #tpu.memory_space<vmem>>, vector<8x16xf32>
    tpu.vector_store %arg8[%c0_23, %c0_24], %31 {strides = array<i32>} : memref<8x16xf32, #tpu.memory_space<vmem>>, vector<8x16xf32>,
    return
  }
  func.func @transform_0(%arg0: i32) -> (i32, i32) {
    %c0_i32 = arith.constant 0 : i32
    %c0_i32_0 = arith.constant 0 : i32
    return %arg0, %c0_i32 : i32, i32
  }
  func.func @transform_1(%arg0: i32) -> (i32, i32) {
    %c0_i32 = arith.constant 0 : i32
    %c0_i32_0 = arith.constant 0 : i32
    %c0_i32_1 = arith.constant 0 : i32
    return %c0_i32, %c0_i32_0 : i32, i32
  }
  func.func @transform_2(%arg0: i32) -> (i32, i32) {
    %c0_i32 = arith.constant 0 : i32
    %c0_i32_0 = arith.constant 0 : i32
    %c0_i32_1 = arith.constant 0 : i32
    return %c0_i32, %c0_i32_0 : i32, i32
  }
  func.func @transform_3(%arg0: i32) -> (i32, i32, i32) {
    %c0_i32 = arith.constant 0 : i32
    %c0_i32_0 = arith.constant 0 : i32
    %c0_i32_1 = arith.constant 0 : i32
    %c0_i32_2 = arith.constant 0 : i32
    return %c0_i32, %c0_i32_0, %c0_i32_1 : i32, i32, i32
  }
  func.func @transform_4(%arg0: i32) -> (i32, i32, i32) {
    %c0_i32 = arith.constant 0 : i32
    %c0_i32_0 = arith.constant 0 : i32
    %c0_i32_1 = arith.constant 0 : i32
    %c0_i32_2 = arith.constant 0 : i32
    return %c0_i32, %c0_i32_0, %c0_i32_1 : i32, i32, i32
  }
  func.func @transform_5(%arg0: i32) -> (i32, i32) {
    %c0_i32 = arith.constant 0 : i32
    %c0_i32_0 = arith.constant 0 : i32
    %c0_i32_1 = arith.constant 0 : i32
    return %c0_i32, %c0_i32_0 : i32, i32
  }
  func.func @transform_6(%arg0: i32) -> (i32, i32) {
    %c0_i32 = arith.constant 0 : i32
    %c0_i32_0 = arith.constant 0 : i32
    %c0_i32_1 = arith.constant 0 : i32
    return %c0_i32, %c0_i32_0 : i32, i32
  }
  func.func @transform_7(%arg0: i32) -> (i32, i32) {
    %c0_i32 = arith.constant 0 : i32
    %c0_i32_0 = arith.constant 0 : i32
    return %arg0, %c0_i32 : i32, i32
  }
}

</mosaic_0001>

<bundles_post_ra>
// kernel: tpu_custom_call.1
= control target key start
LH: loop header
LB: loop body
LE: loop exit
PB: predicated region body
PF: predicated region fallthrough
CT: control target
= control target key end

     0   :  { %s3253_s0 = inlined_call_operand.vmem [shape: f32[8,2048], index: 0, kind: input, shape index: {}]   ;;  %s3254_s1 = inlined_call_operand.vmem [shape: bf16[2048,32], index: 1, kind: input, shape index: {}]   ;;  %s3255_s2 = inlined_call_operand.vmem [shape: f32[1,32], index: 2, kind: input, shape index: {}]   ;;  %s3256_s3 = inlined_call_operand.vmem [shape: bf16[2,32,32], index: 3, kind: input, shape index: {}]   ;;  %s3257_s4 = inlined_call_operand.vmem [shape: f32[2,1,32], index: 4, kind: input, shape index: {}]   ;;  %s3258_s5 = inlined_call_operand.vmem [shape: bf16[32,16], index: 5, kind: input, shape index: {}]   ;;  %s3259_s6 = inlined_call_operand.vmem [shape: f32[1,16], index: 6, kind: input, shape index: {}]   ;;  %s3260_s7 = inlined_call_operand.hbm [shape: f32[8,16], index: 7, kind: output, shape index: {}]  }
   0x1   :  { %v1963_v0 = vld [vmem:[%s3254_s1 + $0x40] sm:$0xff]   ;;  %v1964_v4 = vld [vmem:[%s3254_s1 + $0x48] sm:$0xff]   ;;  %v1965_v8 = vld [vmem:[%s3254_s1 + $0x50] sm:$0xff]  }
   0x2   :  { %v1421_v1 = vld [vmem:[%s3254_s1] sm:$0xff]   ;;  %2416 = vmatprep.subr.bf16.mxu0 %v1963_v0  ;;  %v1980_v5 = vld [vmem:[%s3254_s1 + $0xc8] sm:$0xff]   ;;  %v1981_v9 = vld [vmem:[%s3254_s1 + $0xd0] sm:$0xff]  }
   0x3   :  { %v1979_v2 = vld [vmem:[%s3254_s1 + $0xc0] sm:$0xff]   ;;  %2418 = vmatpush3.bf16.msra.mxu0 %v1421_v1  ;;  %v1956_v6 = vld [vmem:[%s3254_s1 + $0x8] sm:$0xff]   ;;  %v1957_v10 = vld [vmem:[%s3254_s1 + $0x10] sm:$0xff]  }
   0x4   :  { %2448 = vmatprep.subr.bf16.mxu1 %v1979_v2  ;;  %v1971_v3 = vld [vmem:[%s3254_s1 + $0x80] sm:$0xff]   ;;  %2420 = vmatprep.subr.bf16.mxu0 %v1964_v4  ;;  %v1972_v7 = vld [vmem:[%s3254_s1 + $0x88] sm:$0xff]   ;;  %v1973_v11 = vld [vmem:[%s3254_s1 + $0x90] sm:$0xff]  }
   0x5   :  { %2450 = vmatpush3.bf16.msra.mxu1 %v1971_v3  ;;  %v1966_v12 = vld [vmem:[%s3254_s1 + $0x58] sm:$0xff]   ;;  %v28_v14 = vld [vmem:[%s3253_s0 + $0x8] sm:$0xff]  ;;  %v1967_v18 = vld [vmem:[%s3254_s1 + $0x60] sm:$0xff]  }
   0x6   :  { %2452 = vmatprep.subr.bf16.mxu1 %v1980_v5  ;;  %v1982_v13 = vld [vmem:[%s3254_s1 + $0xd8] sm:$0xff]   ;;  %v1983_v19 = vld [vmem:[%s3254_s1 + $0xe0] sm:$0xff]   ;;  %626 = vmatprep.mubr.f32.mxu0 %v28_v14  ;;  %v1968_v22 = vld [vmem:[%s3254_s1 + $0x68] sm:$0xff]  }
   0x7   :  { %2422 = vmatpush3.bf16.msra.mxu0 %v1956_v6  ;;  %v1958_v15 = vld [vmem:[%s3254_s1 + $0x18] sm:$0xff]   ;;  %v1959_v20 = vld [vmem:[%s3254_s1 + $0x20] sm:$0xff]   ;;  %v1984_v23 = vld [vmem:[%s3254_s1 + $0xe8] sm:$0xff]  }
   0x8   :  { %2424 = vmatprep.subr.bf16.mxu0 %v1965_v8  ;;  %v1974_v16 = vld [vmem:[%s3254_s1 + $0x98] sm:$0xff]   ;;  %v1975_v21 = vld [vmem:[%s3254_s1 + $0xa0] sm:$0xff]   ;;  %v1960_v24 = vld [vmem:[%s3254_s1 + $0x28] sm:$0xff]  }
   0x9   :  { %2454 = vmatpush3.bf16.msra.mxu1 %v1972_v7  ;;  %v30_v17 = vld [vmem:[%s3253_s0 + $0x18] sm:$0xff]  ;;  %v1976_v25 = vld [vmem:[%s3254_s1 + $0xa8] sm:$0xff]   ;;  %v1969_v26 = vld [vmem:[%s3254_s1 + $0x70] sm:$0xff]  }
   0xa   :  { %2456 = vmatprep.subr.bf16.mxu1 %v1981_v9  ;;  %696 = vmatprep.mubr.f32.mxu1 %v30_v17  ;;  %v1985_v27 = vld [vmem:[%s3254_s1 + $0xf0] sm:$0xff]   ;;  %v1970_v30 = vld [vmem:[%s3254_s1 + $0x78] sm:$0xff]   ;;  %v1995_v34 = vld [vmem:[%s3254_s1 + $0x140] sm:$0xff]  }
   0xb   :  { %2426 = vmatpush3.bf16.msra.mxu0 %v1957_v10  ;;  %v1961_v28 = vld [vmem:[%s3254_s1 + $0x30] sm:$0xff]   ;;  %v1986_v31 = vld [vmem:[%s3254_s1 + $0xf8] sm:$0xff]   ;;  %v2011_v35 = vld [vmem:[%s3254_s1 + $0x1c0] sm:$0xff]  }
   0xc   :  { %2428 = vmatprep.subr.bf16.mxu0 %v1966_v12  ;;  %v1977_v29 = vld [vmem:[%s3254_s1 + $0xb0] sm:$0xff]   ;;  %v1962_v32 = vld [vmem:[%s3254_s1 + $0x38] sm:$0xff]   ;;  %v27_v36 = vld [vmem:[%s3253_s0] sm:$0xff] }
   0xd   :  { %2458 = vmatpush3.bf16.msra.mxu1 %v1973_v11  ;;  %v1978_v33 = vld [vmem:[%s3254_s1 + $0xb8] sm:$0xff]   ;;  %v29_v37 = vld [vmem:[%s3253_s0 + $0x10] sm:$0xff]  ;;  %v1987_v38 = vld [vmem:[%s3254_s1 + $0x100] sm:$0xff]  }
   0xe   :  { %2460 = vmatprep.subr.bf16.mxu1 %v1982_v13  ;;  %v2003_v39 = vld [vmem:[%s3254_s1 + $0x180] sm:$0xff]   ;;  %v1996_v40 = vld [vmem:[%s3254_s1 + $0x148] sm:$0xff]   ;;  %v34_v43 = vld [vmem:[%s3253_s0 + $0x38] sm:$0xff] }
   0xf   :  { %2430 = vmatpush3.bf16.msra.mxu0 %v1958_v15  ;;  %v2012_v41 = vld [vmem:[%s3254_s1 + $0x1c8] sm:$0xff]   ;;  %v1997_v46 = vld [vmem:[%s3254_s1 + $0x150] sm:$0xff]   ;;  %v1998_v50 = vld [vmem:[%s3254_s1 + $0x158] sm:$0xff]  }
  0x10   :  { %2432 = vmatprep.subr.bf16.mxu0 %v1967_v18  ;;  %v32_v42 = vld [vmem:[%s3253_s0 + $0x28] sm:$0xff]  ;;  %v2013_v47 = vld [vmem:[%s3254_s1 + $0x1d0] sm:$0xff]   ;;  %v2014_v51 = vld [vmem:[%s3254_s1 + $0x1d8] sm:$0xff]  }
  0x11   :  { %2462 = vmatpush3.bf16.msra.mxu1 %v1974_v16  ;;  %v1988_v44 = vld [vmem:[%s3254_s1 + $0x108] sm:$0xff]   ;;  %v1989_v48 = vld [vmem:[%s3254_s1 + $0x110] sm:$0xff]   ;;  %v1990_v52 = vld [vmem:[%s3254_s1 + $0x118] sm:$0xff]  }
  0x12   :  { %2464 = vmatprep.subr.bf16.mxu1 %v1983_v19  ;;  %v2004_v45 = vld [vmem:[%s3254_s1 + $0x188] sm:$0xff]   ;;  %v2005_v49 = vld [vmem:[%s3254_s1 + $0x190] sm:$0xff]   ;;  %v2006_v53 = vld [vmem:[%s3254_s1 + $0x198] sm:$0xff]  }
  0x13   :  { %2434 = vmatpush3.bf16.msra.mxu0 %v1959_v20  ;;  %v1999_v54 = vld [vmem:[%s3254_s1 + $0x160] sm:$0xff]   ;;  %v2000_v58 = vld [vmem:[%s3254_s1 + $0x168] sm:$0xff]  }
  0x14   :  { %2436 = vmatprep.subr.bf16.mxu0 %v1968_v22  ;;  %v2015_v55 = vld [vmem:[%s3254_s1 + $0x1e0] sm:$0xff]   ;;  %v2016_v59 = vld [vmem:[%s3254_s1 + $0x1e8] sm:$0xff]  }
  0x15   :  { %2466 = vmatpush3.bf16.msra.mxu1 %v1975_v21  ;;  %v1991_v56 = vld [vmem:[%s3254_s1 + $0x120] sm:$0xff]  }
  0x16   :  { %2468 = vmatprep.subr.bf16.mxu1 %v1984_v23  ;;  %v2007_v57 = vld [vmem:[%s3254_s1 + $0x1a0] sm:$0xff]  }
  0x17   :  { %2438 = vmatpush3.bf16.msra.mxu0 %v1960_v24 }
  0x18   :  { %2440 = vmatprep.subr.bf16.mxu0 %v1969_v26 }
  0x19   :  { %2470 = vmatpush3.bf16.msra.mxu1 %v1976_v25 }
  0x1a   :  { %2472 = vmatprep.subr.bf16.mxu1 %v1985_v27 }
  0x1b   :  { %2442 = vmatpush3.bf16.msra.mxu0 %v1961_v28 }
  0x1c   :  { %2444 = vmatprep.subr.bf16.mxu0 %v1970_v30 }
  0x1d   :  { %2474 = vmatpush3.bf16.msra.mxu1 %v1977_v29 }
  0x1e   :  { %2476 = vmatprep.subr.bf16.mxu1 %v1986_v31 }
  0x1f   :  { %2446 = vmatpush3.bf16.msra.mxu0 %v1962_v32 }
  0x20   :  { %2480 = vmatprep.subr.bf16.mxu0 %v1995_v34 }
  0x21   :  { %2478 = vmatpush3.bf16.msra.mxu1 %v1978_v33 }
  0x22   :  { %2512 = vmatprep.subr.bf16.mxu1 %v2011_v35  ;;  %627 = vmatmul.mubr.f32.vlgmr.msra.gmra.mrb[0].mxu0 %v27_v36 }
  0x23   :  { %2482 = vmatpush3.bf16.msra.mxu0 %v1987_v38  ;;  %766 = vmatprep.mubr.f32.mxu0 %v32_v42 }
  0x24   :  { %697 = vmatmul.mubr.f32.vlgmr.msra.gmra.mrb[0].mxu1 %v29_v37  ;;  %2484 = vmatprep.subr.bf16.mxu0 %v1996_v40 }
  0x25   :  { %2514 = vmatpush3.bf16.msra.mxu1 %v2003_v39  ;;  %836 = vmatprep.mubr.f32.mxu1 %v34_v43 }
  0x26   :  { %2516 = vmatprep.subr.bf16.mxu1 %v2012_v41 }
  0x27   :  { %2486 = vmatpush3.bf16.msra.mxu0 %v1988_v44 }
  0x28   :  { %2488 = vmatprep.subr.bf16.mxu0 %v1997_v46 }
  0x29   :  { %2518 = vmatpush3.bf16.msra.mxu1 %v2004_v45 }
  0x2a   :  { %2520 = vmatprep.subr.bf16.mxu1 %v2013_v47 }
  0x2b   :  { %2490 = vmatpush3.bf16.msra.mxu0 %v1989_v48 }
  0x2c   :  { %2492 = vmatprep.subr.bf16.mxu0 %v1998_v50 }
  0x2d   :  { %2522 = vmatpush3.bf16.msra.mxu1 %v2005_v49 }
  0x2e   :  { %2524 = vmatprep.subr.bf16.mxu1 %v2014_v51 }
  0x2f   :  { %2494 = vmatpush3.bf16.msra.mxu0 %v1990_v52 }
  0x30   :  { %2496 = vmatprep.subr.bf16.mxu0 %v1999_v54 }
  0x31   :  { %2526 = vmatpush3.bf16.msra.mxu1 %v2006_v53 }
  0x32   :  { %2528 = vmatprep.subr.bf16.mxu1 %v2015_v55 }
  0x33   :  { %12 = vsyncpa [#allocation3], 0  ;;  %2498 = vmatpush3.bf16.msra.mxu0 %v1991_v56  ;;  %v1992_v60 = vld [vmem:[%s3254_s1 + $0x128] sm:$0xff]   ;;  %v2001_v62 = vld [vmem:[%s3254_s1 + $0x170] sm:$0xff]   ;;  %vm2724_vm0 = vmmov 0   ;;  %vm1138_vm1 = vcmask 261120  }
  0x34   :  { %2500 = vmatprep.subr.bf16.mxu0 %v2000_v58  ;;  %v2008_v61 = vld [vmem:[%s3254_s1 + $0x1a8] sm:$0xff]   ;;  %v2017_v63 = vld [vmem:[%s3254_s1 + $0x1f0] sm:$0xff]   ;;  %v2002_v2 = vld [vmem:[%s3254_s1 + $0x178] sm:$0xff]   ;;  %s2726_s29 = smov [#allocation2]   ;;  %vm1392_vm2 = vcmask 130048  }
  0x35   :  { %2530 = vmatpush3.bf16.msra.mxu1 %v2007_v57  ;;  %v1993_v0 = vld [vmem:[%s3254_s1 + $0x130] sm:$0xff]   ;;  %v2018_v3 = vld [vmem:[%s3254_s1 + $0x1f8] sm:$0xff]   ;;  %v2027_v6 = vld [vmem:[%s3254_s1 + $0x240] sm:$0xff]   ;;  %s1400_s30 = sshll.u32 %s2726_s29, 4  ;;  %s1401_s30 = int_to_ptr.vmem [resolvable:$true] %s1400_s30 }
  0x36   :  { %2532 = vmatprep.subr.bf16.mxu1 %v2016_v59  ;;  %v2009_v1 = vld [vmem:[%s3254_s1 + $0x1b0] sm:$0xff]   ;;  %v1994_v4 = vld [vmem:[%s3254_s1 + $0x138] sm:$0xff]   ;;  %v2043_v7 = vld [vmem:[%s3254_s1 + $0x2c0] sm:$0xff]   ;;  %p2704_p1 = scmp.lt.s32.totalorder %s1401_s30, %s1401_s30 }
  0x37   :  { %2502 = vmatpush3.bf16.msra.mxu0 %v1992_v60  ;;  %v2010_v5 = vld [vmem:[%s3254_s1 + $0x1b8] sm:$0xff]   ;;  %v31_v8 = vld [vmem:[%s3253_s0 + $0x20] sm:$0xff]  ;;  %v33_v9 = vld [vmem:[%s3253_s0 + $0x30] sm:$0xff] }
  0x38   :  { %2504 = vmatprep.subr.bf16.mxu0 %v2001_v62  ;;  %v2019_v10 = vld [vmem:[%s3254_s1 + $0x200] sm:$0xff]   ;;  %v2028_v12 = vld [vmem:[%s3254_s1 + $0x248] sm:$0xff]   ;;  %v38_v15 = vld [vmem:[%s3253_s0 + $0x58] sm:$0xff] }
  0x39   :  { %2534 = vmatpush3.bf16.msra.mxu1 %v2008_v61  ;;  %v2035_v11 = vld [vmem:[%s3254_s1 + $0x280] sm:$0xff]   ;;  %v2044_v13 = vld [vmem:[%s3254_s1 + $0x2c8] sm:$0xff]   ;;  %v2029_v18 = vld [vmem:[%s3254_s1 + $0x250] sm:$0xff]  }
  0x3a   :  { %2536 = vmatprep.subr.bf16.mxu1 %v2017_v63  ;;  %v36_v14 = vld [vmem:[%s3253_s0 + $0x48] sm:$0xff]  ;;  %v2045_v19 = vld [vmem:[%s3254_s1 + $0x2d0] sm:$0xff]   ;;  %v2030_v22 = vld [vmem:[%s3254_s1 + $0x258] sm:$0xff]  }
  0x3b   :  { %2506 = vmatpush3.bf16.msra.mxu0 %v1993_v0  ;;  %v2020_v16 = vld [vmem:[%s3254_s1 + $0x208] sm:$0xff]   ;;  %v2021_v20 = vld [vmem:[%s3254_s1 + $0x210] sm:$0xff]   ;;  %v2046_v23 = vld [vmem:[%s3254_s1 + $0x2d8] sm:$0xff]  }
  0x3c   :  { %2508 = vmatprep.subr.bf16.mxu0 %v2002_v2  ;;  %v2036_v17 = vld [vmem:[%s3254_s1 + $0x288] sm:$0xff]   ;;  %v2037_v21 = vld [vmem:[%s3254_s1 + $0x290] sm:$0xff]   ;;  %v2022_v24 = vld [vmem:[%s3254_s1 + $0x218] sm:$0xff]  }
  0x3d   :  { %2538 = vmatpush3.bf16.msra.mxu1 %v2009_v1  ;;  %v2038_v25 = vld [vmem:[%s3254_s1 + $0x298] sm:$0xff]   ;;  %v2031_v26 = vld [vmem:[%s3254_s1 + $0x260] sm:$0xff]   ;;  %v2032_v30 = vld [vmem:[%s3254_s1 + $0x268] sm:$0xff]  }
  0x3e   :  { %2540 = vmatprep.subr.bf16.mxu1 %v2018_v3  ;;  %v2047_v27 = vld [vmem:[%s3254_s1 + $0x2e0] sm:$0xff]   ;;  %v2048_v31 = vld [vmem:[%s3254_s1 + $0x2e8] sm:$0xff]   ;;  %v2033_v34 = vld [vmem:[%s3254_s1 + $0x270] sm:$0xff]  }
  0x3f   :  { %2510 = vmatpush3.bf16.msra.mxu0 %v1994_v4  ;;  %v2023_v28 = vld [vmem:[%s3254_s1 + $0x220] sm:$0xff]   ;;  %v2024_v32 = vld [vmem:[%s3254_s1 + $0x228] sm:$0xff]   ;;  %v2049_v35 = vld [vmem:[%s3254_s1 + $0x2f0] sm:$0xff]  }
  0x40   :  { %2544 = vmatprep.subr.bf16.mxu0 %v2027_v6  ;;  %v2039_v29 = vld [vmem:[%s3254_s1 + $0x2a0] sm:$0xff]   ;;  %v2040_v33 = vld [vmem:[%s3254_s1 + $0x2a8] sm:$0xff]   ;;  %v2025_v36 = vld [vmem:[%s3254_s1 + $0x230] sm:$0xff]  }
  0x41   :  { %2542 = vmatpush3.bf16.msra.mxu1 %v2010_v5  ;;  %v2041_v37 = vld [vmem:[%s3254_s1 + $0x2b0] sm:$0xff]   ;;  %v2034_v38 = vld [vmem:[%s3254_s1 + $0x278] sm:$0xff]   ;;  %v2059_v42 = vld [vmem:[%s3254_s1 + $0x340] sm:$0xff]  }
  0x42   :  { %2576 = vmatprep.subr.bf16.mxu1 %v2043_v7  ;;  %767 = vmatmul.mubr.f32.vlgmr.msra.gmra.mrb[2].mxu0 %v31_v8  ;;  %v2050_v39 = vld [vmem:[%s3254_s1 + $0x2f8] sm:$0xff]   ;;  %v2075_v43 = vld [vmem:[%s3254_s1 + $0x3c0] sm:$0xff]   ;;  %v37_v45 = vld [vmem:[%s3253_s0 + $0x50] sm:$0xff] }
  0x43   :  { %2546 = vmatpush3.bf16.msra.mxu0 %v2019_v10  ;;  %906 = vmatprep.mubr.f32.mxu0 %v36_v14  ;;  %v2026_v40 = vld [vmem:[%s3254_s1 + $0x238] sm:$0xff]   ;;  %v35_v44 = vld [vmem:[%s3253_s0 + $0x40] sm:$0xff]  ;;  %v2060_v48 = vld [vmem:[%s3254_s1 + $0x348] sm:$0xff]  }
  0x44   :  { %837 = vmatmul.mubr.f32.vlgmr.msra.gmra.mrb[2].mxu1 %v33_v9  ;;  %2548 = vmatprep.subr.bf16.mxu0 %v2028_v12  ;;  %v2042_v41 = vld [vmem:[%s3254_s1 + $0x2b8] sm:$0xff]   ;;  %v2051_v46 = vld [vmem:[%s3254_s1 + $0x300] sm:$0xff]   ;;  %v2076_v49 = vld [vmem:[%s3254_s1 + $0x3c8] sm:$0xff]  }
  0x45   :  { %2578 = vmatpush3.bf16.msra.mxu1 %v2035_v11  ;;  %976 = vmatprep.mubr.f32.mxu1 %v38_v15  ;;  %v2067_v47 = vld [vmem:[%s3254_s1 + $0x380] sm:$0xff]   ;;  %v40_v50 = vld [vmem:[%s3253_s0 + $0x68] sm:$0xff]  ;;  %v42_v51 = vld [vmem:[%s3253_s0 + $0x78] sm:$0xff] }
  0x46   :  { %2580 = vmatprep.subr.bf16.mxu1 %v2044_v13  ;;  %v2052_v52 = vld [vmem:[%s3254_s1 + $0x308] sm:$0xff]   ;;  %v2061_v54 = vld [vmem:[%s3254_s1 + $0x350] sm:$0xff]   ;;  %v2062_v58 = vld [vmem:[%s3254_s1 + $0x358] sm:$0xff]  }
  0x47   :  { %2550 = vmatpush3.bf16.msra.mxu0 %v2020_v16  ;;  %v2068_v53 = vld [vmem:[%s3254_s1 + $0x388] sm:$0xff]   ;;  %v2077_v55 = vld [vmem:[%s3254_s1 + $0x3d0] sm:$0xff]   ;;  %v2078_v59 = vld [vmem:[%s3254_s1 + $0x3d8] sm:$0xff]  }
  0x48   :  { %2552 = vmatprep.subr.bf16.mxu0 %v2029_v18  ;;  %v2053_v56 = vld [vmem:[%s3254_s1 + $0x310] sm:$0xff]   ;;  %v2054_v60 = vld [vmem:[%s3254_s1 + $0x318] sm:$0xff]   ;;  %v2063_v62 = vld [vmem:[%s3254_s1 + $0x360] sm:$0xff]   ;;  %v2725_v18 = vmov 0.0  }
  0x49   :  { %2582 = vmatpush3.bf16.msra.mxu1 %v2036_v17  ;;  %v2069_v57 = vld [vmem:[%s3254_s1 + $0x390] sm:$0xff]   ;;  %v2070_v61 = vld [vmem:[%s3254_s1 + $0x398] sm:$0xff]   ;;  %v2079_v63 = vld [vmem:[%s3254_s1 + $0x3e0] sm:$0xff]   ;;  %v2723_v17 = vmov 0.0|0.0  }
  0x4a   :  { %2584 = vmatprep.subr.bf16.mxu1 %v2045_v19  ;;  %v2055_v0 = vld [vmem:[%s3254_s1 + $0x320] sm:$0xff]   ;;  %v2064_v2 = vld [vmem:[%s3254_s1 + $0x368] sm:$0xff]   ;;  %v2065_v6 = vld [vmem:[%s3254_s1 + $0x370] sm:$0xff]  }
  0x4b   :  { %2554 = vmatpush3.bf16.msra.mxu0 %v2021_v20  ;;  %v2071_v1 = vld [vmem:[%s3254_s1 + $0x3a0] sm:$0xff]   ;;  %v2080_v3 = vld [vmem:[%s3254_s1 + $0x3e8] sm:$0xff]   ;;  %v2081_v7 = vld [vmem:[%s3254_s1 + $0x3f0] sm:$0xff]  }
  0x4c   :  { %2556 = vmatprep.subr.bf16.mxu0 %v2030_v22  ;;  %v2056_v4 = vld [vmem:[%s3254_s1 + $0x328] sm:$0xff]   ;;  %v2057_v8 = vld [vmem:[%s3254_s1 + $0x330] sm:$0xff]   ;;  %v2066_v10 = vld [vmem:[%s3254_s1 + $0x378] sm:$0xff]  }
  0x4d   :  { %2586 = vmatpush3.bf16.msra.mxu1 %v2037_v21  ;;  %v2072_v5 = vld [vmem:[%s3254_s1 + $0x3a8] sm:$0xff]   ;;  %v2073_v9 = vld [vmem:[%s3254_s1 + $0x3b0] sm:$0xff]   ;;  %v2082_v11 = vld [vmem:[%s3254_s1 + $0x3f8] sm:$0xff]  }
  0x4e   :  { %2588 = vmatprep.subr.bf16.mxu1 %v2046_v23  ;;  %v2058_v12 = vld [vmem:[%s3254_s1 + $0x338] sm:$0xff]   ;;  %v39_v14 = vld [vmem:[%s3253_s0 + $0x60] sm:$0xff]  ;;  %v41_v15 = vld [vmem:[%s3253_s0 + $0x70] sm:$0xff] }
  0x4f   :  { %2558 = vmatpush3.bf16.msra.mxu0 %v2022_v24  ;;  %v2074_v13 = vld [vmem:[%s3254_s1 + $0x3b8] sm:$0xff]   ;;  %v1933_v16 = vld [vmem:[%s3256_s3] sm:$0xff]   ;;  %v2083_v19 = vld [vmem:[%s3256_s3 + $0x8] sm:$0xff]  }
  0x50   :  { %2560 = vmatprep.subr.bf16.mxu0 %v2031_v26  ;;  %v1408_v22 = vld [vmem:[%s3255_s2] ss:$0 sm:$0xff] }
  0x51   :  { %2590 = vmatpush3.bf16.msra.mxu1 %v2038_v25 }
  0x52   :  { %2592 = vmatprep.subr.bf16.mxu1 %v2047_v27 }
  0x53   :  { %2562 = vmatpush3.bf16.msra.mxu0 %v2023_v28 }
  0x54   :  { %2564 = vmatprep.subr.bf16.mxu0 %v2032_v30 }
  0x55   :  { %2594 = vmatpush3.bf16.msra.mxu1 %v2039_v29 }
  0x56   :  { %2596 = vmatprep.subr.bf16.mxu1 %v2048_v31 }
  0x57   :  { %2566 = vmatpush3.bf16.msra.mxu0 %v2024_v32 }
  0x58   :  { %2568 = vmatprep.subr.bf16.mxu0 %v2033_v34 }
  0x59   :  { %2598 = vmatpush3.bf16.msra.mxu1 %v2040_v33 }
  0x5a   :  { %2600 = vmatprep.subr.bf16.mxu1 %v2049_v35 }
  0x5b   :  { %2570 = vmatpush3.bf16.msra.mxu0 %v2025_v36 }
  0x5c   :  { %2572 = vmatprep.subr.bf16.mxu0 %v2034_v38 }
  0x5d   :  { %2602 = vmatpush3.bf16.msra.mxu1 %v2041_v37 }
  0x5e   :  { %2604 = vmatprep.subr.bf16.mxu1 %v2050_v39 }
  0x5f   :  { %2574 = vmatpush3.bf16.msra.mxu0 %v2026_v40 }
  0x60   :  { %2608 = vmatprep.subr.bf16.mxu0 %v2059_v42 }
  0x61   :  { %2606 = vmatpush3.bf16.msra.mxu1 %v2042_v41 }
  0x62   :  { %2640 = vmatprep.subr.bf16.mxu1 %v2075_v43  ;;  %907 = vmatmul.mubr.f32.vlgmr.msra.gmra.mrb[4].mxu0 %v35_v44 }
  0x63   :  { %2610 = vmatpush3.bf16.msra.mxu0 %v2051_v46  ;;  %1046 = vmatprep.mubr.f32.mxu0 %v40_v50 }
  0x64   :  { %977 = vmatmul.mubr.f32.vlgmr.msra.gmra.mrb[4].mxu1 %v37_v45  ;;  %2612 = vmatprep.subr.bf16.mxu0 %v2060_v48 }
  0x65   :  { %2642 = vmatpush3.bf16.msra.mxu1 %v2067_v47  ;;  %1116 = vmatprep.mubr.f32.mxu1 %v42_v51 }
  0x66   :  { %2644 = vmatprep.subr.bf16.mxu1 %v2076_v49 }
  0x67   :  { %2614 = vmatpush3.bf16.msra.mxu0 %v2052_v52 }
  0x68   :  { %2616 = vmatprep.subr.bf16.mxu0 %v2061_v54  ;;  %v2084_v54 = vld [vmem:[%s3256_s3 + $0x10] sm:$0xff]  }
  0x69   :  { %2646 = vmatpush3.bf16.msra.mxu1 %v2068_v53 }
  0x6a   :  { %2648 = vmatprep.subr.bf16.mxu1 %v2077_v55  ;;  %v2085_v55 = vld [vmem:[%s3256_s3 + $0x18] sm:$0xff]  }
  0x6b   :  { %2618 = vmatpush3.bf16.msra.mxu0 %v2053_v56  ;;  %v1409_v56 = vld [vmem:[%s3257_s4] ss:$0 sm:$0xff] }
  0x6c   :  { %2620 = vmatprep.subr.bf16.mxu0 %v2062_v58 }
  0x6d   :  { %2650 = vmatpush3.bf16.msra.mxu1 %v2069_v57 }
  0x6e   :  { %2652 = vmatprep.subr.bf16.mxu1 %v2078_v59 }
  0x6f   :  { %2622 = vmatpush3.bf16.msra.mxu0 %v2054_v60 }
  0x70   :  { %2624 = vmatprep.subr.bf16.mxu0 %v2063_v62  ;;  %v2086_v62 = vld [vmem:[%s3258_s5 + $0x8] sm:$0xff]  }
  0x71   :  { %2654 = vmatpush3.bf16.msra.mxu1 %v2070_v61  ;;  %v1949_v61 = vld [vmem:[%s3258_s5] sm:$0xff]  }
  0x72   :  { %2656 = vmatprep.subr.bf16.mxu1 %v2079_v63  ;;  %v1416_v63 = vld [vmem:[%s3257_s4 + $0x1] ss:$0 sm:$0xff]  ;;  %s2699_s4 = scalar_lea.vmem %s1401_s30, 128 }
  0x73   :  { %2626 = vmatpush3.bf16.msra.mxu0 %v2055_v0  ;;  %p2700_p0 = scmp.ne.s32.totalorder %s1401_s30, %s2699_s4  ;;  %p2705_p2 = scmp.lt.s32.totalorder %s2699_s4, %s2699_s4 }
  0x74   :  { %2628 = vmatprep.subr.bf16.mxu0 %v2064_v2 }
  0x75   :  { %2658 = vmatpush3.bf16.msra.mxu1 %v2071_v1  ;;  %p2706_p3 = por %p2705_p2, %p2704_p1 }
  0x76   :  { %2660 = vmatprep.subr.bf16.mxu1 %v2080_v3 }
  0x77   :  { %2630 = vmatpush3.bf16.msra.mxu0 %v2056_v4  ;;  %v1418_v4 = vld [vmem:[%s3259_s6] ss:$0 sm:$0xff]  ;;  %p2707_p4 = pnand %p2706_p3, %p2700_p0 }
  0x78   :  { %2632 = vmatprep.subr.bf16.mxu0 %v2065_v6 }
  0x79   :  { %2662 = vmatpush3.bf16.msra.mxu1 %v2072_v5 }
  0x7a   :  { %2664 = vmatprep.subr.bf16.mxu1 %v2081_v7 }
  0x7b   :  { %2634 = vmatpush3.bf16.msra.mxu0 %v2057_v8 }
  0x7c   :  { %2636 = vmatprep.subr.bf16.mxu0 %v2066_v10 }
  0x7d   :  { %2666 = vmatpush3.bf16.msra.mxu1 %v2073_v9 }
  0x7e   :  { %2668 = vmatprep.subr.bf16.mxu1 %v2082_v11 }
  0x7f   :  { %2638 = vmatpush3.bf16.msra.mxu0 %v2058_v12 }
  0x80   :  { %2671 = vmatprep.subr.bf16.mxu0 %v2723_v17 }
  0x81   :  { %2670 = vmatpush3.bf16.msra.mxu1 %v2074_v13 }
  0x82   :  { %1047 = vmatmul.mubr.f32.vlgmr.msra.gmra.mrb[6].mxu0 %v39_v14  ;;  %2677 = vmatprep.subr.bf16.mxu1 %v2723_v17 }
  0x83   :  { %2390 = vmatprep.mubr.msk.f32.mxu0 %vm2724_vm0, %v2725_v18  ;;  %2673 = vmatpush3.bf16.msra.mxu0 %v1933_v16 }
  0x84   :  { %1117 = vmatmul.mubr.f32.vlgmr.msra.gmra.mrb[6].mxu1 %v41_v15  ;;  %2674 = vmatprep.subr.bf16.mxu0 %v2723_v17 }
  0x85   :  { %2401 = vmatprep.mubr.msk.f32.mxu1 %vm2724_vm0, %v2725_v18  ;;  %2679 = vmatpush3.bf16.msra.mxu1 %v2084_v54 }
  0x86   :  { %2680 = vmatprep.subr.bf16.mxu1 %v2723_v17 }
  0x87   :  { %2676 = vmatpush3.bf16.msra.mxu0 %v2083_v19 }
  0x88   :  { %2683 = vmatprep.subr.bf16.mxu0 %v2723_v17 }
  0x89   :  { %2682 = vmatpush3.bf16.msra.mxu1 %v2085_v55 }
  0xf5   :  { %v2119_v20 = vpop.f32.mrb[0].mxu0 }
  0xf6   :  { %v2120_v23 = vpop.f32.mrb[1].mxu0 }
  0xf7   :  { %v2154_v21 = vpop.f32.mrb[0].mxu1  ;;  %v2121_v25 = vadd.f32 %v2120_v23, %v2119_v20 }
  0xf8   :  { %v2155_v24 = vpop.f32.mrb[1].mxu1 }
  0xf9   :  { %v2156_v26 = vadd.f32 %v2155_v24, %v2154_v21  ;;  %v629_v27 = vadd.f32 %v2121_v25, %v1408_v22 }
  0xfb   :  { %v699_v28 = vadd.f32 %v2156_v26, %v629_v27 }
 0x115   :  { %v2189_v29 = vpop.f32.mrb[2].mxu0 }
 0x116   :  { %v2190_v31 = vpop.f32.mrb[3].mxu0 }
 0x117   :  { %v2224_v30 = vpop.f32.mrb[2].mxu1  ;;  %v2191_v33 = vadd.f32 %v2190_v31, %v2189_v29 }
 0x118   :  { %v2225_v32 = vpop.f32.mrb[3].mxu1 }
 0x119   :  { %v2226_v34 = vadd.f32 %v2225_v32, %v2224_v30  ;;  %v769_v35 = vadd.f32 %v2191_v33, %v699_v28 }
 0x11b   :  { %v839_v36 = vadd.f32 %v2226_v34, %v769_v35 }
 0x135   :  { %v2259_v37 = vpop.f32.mrb[4].mxu0 }
 0x136   :  { %v2260_v39 = vpop.f32.mrb[5].mxu0 }
 0x137   :  { %v2294_v38 = vpop.f32.mrb[4].mxu1  ;;  %v2261_v41 = vadd.f32 %v2260_v39, %v2259_v37 }
 0x138   :  { %v2295_v40 = vpop.f32.mrb[5].mxu1 }
 0x139   :  { %v2296_v42 = vadd.f32 %v2295_v40, %v2294_v38  ;;  %v909_v43 = vadd.f32 %v2261_v41, %v839_v36 }
 0x13b   :  { %v979_v44 = vadd.f32 %v2296_v42, %v909_v43 }
 0x155   :  { %v2329_v45 = vpop.f32.mrb[6].mxu0 }
 0x156   :  { %v2330_v47 = vpop.f32.mrb[7].mxu0 }
 0x157   :  { %v2364_v46 = vpop.f32.mrb[6].mxu1  ;;  %v2331_v49 = vadd.f32 %v2330_v47, %v2329_v45 }
 0x158   :  { %v2365_v48 = vpop.f32.mrb[7].mxu1 }
 0x159   :  { %v2366_v50 = vadd.f32 %v2365_v48, %v2364_v46  ;;  %v1049_v51 = vadd.f32 %v2331_v49, %v979_v44 }
 0x15b   :  { %v1119_v52 = vadd.f32 %v2366_v50, %v1049_v51 }
 0x15d   :  { %2693 = vtanh.f32 %v1119_v52 }
 0x167   :  { %v2694_v53 = vpop.eup %2693 }
 0x168   :  { %2391 = vmatmul.mubr.msk.f32.vlgmr.msra.gmra.mrb[8].mxu0 %vm1138_vm1, %v2694_v53 }
 0x169   :  { %2412 = vmatprep.mubr.msk.f32.mxu0 %vm2724_vm0, %v2725_v18  ;;  %2685 = vmatpush3.bf16.msra.mxu0 %v1949_v61 }
 0x16a   :  { %2686 = vmatprep.subr.bf16.mxu0 %v2723_v17 }
 0x16d   :  { %2688 = vmatpush3.bf16.msra.mxu0 %v2086_v62 }
 0x23b   :  { %v1208_v57 = vpop.f32.mrb[8].mxu0 }
 0x23c   :  { %v1209_v58 = vadd.f32 %v1409_v56, %v1208_v57  ;;  %v2392_v59 = vpop.f32.mrb[9].mxu0 }
 0x23e   :  { %2695 = vtanh.f32 %v1209_v58 }
 0x248   :  { %v2696_v60 = vpop.eup %2695 }
 0x249   :  { %2402 = vmatmul.mubr.msk.f32.vlgmr.msra.gmra.mrb[8].mxu1 %vm1138_vm1, %v2696_v60 }
 0x31c   :  { %v1299_v0 = vpop.f32.mrb[8].mxu1 }
 0x31d   :  { %v1300_v1 = vadd.f32 %v1416_v63, %v1299_v0  ;;  %v2403_v2 = vpop.f32.mrb[9].mxu1 }
 0x31f   :  { %2697 = vtanh.f32 %v1300_v1 }
 0x329   :  { %v2698_v3 = vpop.eup %2697 }
 0x32a   :  { %2413 = vmatmul.mubr.msk.f32.vlgmr.msra.gmra.mrb[10].mxu0 %vm1138_vm1, %v2698_v3 }
 0x3fd   :  { %v1388_v5 = vpop.f32.mrb[10].mxu0 }
 0x3fe   :  { %v1389_v6 = vadd.f32 %v1418_v4, %v1388_v5  ;;  %v2414_v7 = vpop.f32.mrb[11].mxu0 }
 0x400   :  { %1393 = vst.msk [vmem:[#allocation2] sm:$0xff] %vm1392_vm2, %v1389_v6 }
 0x401   :  { %2710 = shalt.err (!%p2707_p4)
}
 0x402   :  { %s2711_s9 = scalar_lea.hbm %s3260_s7, 128 }
 0x403   :  { %p2712_p5 = scmp.ne.s32.totalorder %s3260_s7, %s2711_s9  ;;  %p2715_p6 = scmp.lt.u32.totalorder %s2711_s9, %s3260_s7 }
 0x405   :  { %p2717_p7 = pnand %p2715_p6, %p2712_p5 }
 0x407   :  { %2720 = shalt.err (!%p2717_p7)
}
 0x408   :  { %1403 = dma.vmem_to_hbm [thread:$0]  %s1401_s30, 128, %s3260_s7, [#allocation3]  }
 0x409   :  { %2721 = dma.done.wait [#allocation3], 128  }
 0x40a   :  { %2722 = vsyncadd [#allocation3], 4294967168 }
 0x40b   :  { %1407 = vsyncpa [#allocation3], 1 }

</bundles_post_ra>
